<compile_context>
chip_gen: v7x
topology: tpu7x:2x2x1
jax: 0.10.0
libtpu: 0.0.40
codegen_flags: <defaults>
</compile_context>

<pallas_src>
import functools
import math

import jax
import jax.numpy as jnp
from jax import lax
from jax.experimental import pallas as pl
from jax.experimental.pallas import tpu as pltpu

# Matmul operands fed to the MXU in bf16 (f32 accumulation).  Set to
# jnp.float32 for near bit-parity with the fp32 PyTorch reference.
MATMUL_DTYPE = jnp.bfloat16
# Residual stream dtype.  The review suggests bf16 on v5e/v6e for bandwidth;
# kept f32 here to stay close to the fp32 reference (gate a bf16 switch on an
# accuracy check).
RESIDUAL_DTYPE = jnp.float32

ROW_TILE = 512          # rows per grid step for row-tiled linear/LN kernels
MLP_ROW_TILE = 256      # rows per grid step for the fused LN+MLP kernel
MLP_HIDDEN_CHUNK = 1024 # in-kernel hidden-dim chunk for the fused MLP
LN_EPS = 1e-5


# ----------------------------------------------------------------------------
# Per-chip VMEM budget
# ----------------------------------------------------------------------------

def _pick_vmem_limit():
    """Scoped-VMEM cap: ~96 MiB on 128 MiB parts (v5e/v6e), ~48 MiB on 64 MiB
    parts (v7x).  Falls back to a conservative 48 MiB if the query fails."""
    default = 48 * 1024 * 1024
    try:
        cap = int(pltpu.get_tpu_info().vmem_capacity_bytes)
    except Exception:
        return default
    return int(min(96 * 1024 * 1024, max(32 * 1024 * 1024, cap - 16 * 1024 * 1024)))


VMEM_LIMIT = _pick_vmem_limit()


# ----------------------------------------------------------------------------
# Single-buffering probe for invariant (weight) operands
# ----------------------------------------------------------------------------

def _probe_kernel(x_ref, o_ref):
    o_ref[...] = x_ref[...] + 1.0


def _probe_single_buffer_mode():
    """Return pl.Buffered(1) if this Pallas build supports single-buffered
    invariant BlockSpecs, else None (default double buffering)."""
    if not hasattr(pl, "Buffered"):
        return None
    try:
        mode = pl.Buffered(1)
        out = pl.pallas_call(
            _probe_kernel,
            grid=(2,),
            in_specs=[pl.BlockSpec((8, 128), lambda i: (0, 0), pipeline_mode=mode)],
            out_specs=pl.BlockSpec((8, 128), lambda i: (0, 0)),
            out_shape=jax.ShapeDtypeStruct((8, 128), jnp.float32),
        )(jnp.zeros((8, 128), jnp.float32))
        jax.block_until_ready(out)
        return mode
    except Exception:
        return None


_WEIGHT_PIPELINE_MODE = _probe_single_buffer_mode()


def _const_spec(shape, grid_rank=1):
    """BlockSpec for grid-invariant operands (weights/biases/LN params):
    constant index_map + single buffering when supported."""
    zeros = (0,) * len(shape)
    if grid_rank == 1:
        index_map = lambda i: zeros
    elif grid_rank == 2:
        index_map = lambda i, j: zeros
    else:
        index_map = lambda *args: zeros
    if _WEIGHT_PIPELINE_MODE is not None:
        return pl.BlockSpec(shape, index_map, pipeline_mode=_WEIGHT_PIPELINE_MODE)
    return pl.BlockSpec(shape, index_map)


def _compiler_params(n_parallel_axes=1):
    return pltpu.CompilerParams(
        dimension_semantics=("parallel",) * n_parallel_axes,
        vmem_limit_bytes=VMEM_LIMIT)


def _row_tile(m, tile):
    # Whole array when small (block must be (8,128)-divisible or equal full dims).
    return m if m <= tile else tile


# ----------------------------------------------------------------------------
# In-kernel helpers
# ----------------------------------------------------------------------------

def _gelu(x):
    # tanh GELU: one EUP tanh instead of a ~12-op VALU erf polynomial.
    # ~1e-3 max abs deviation from torch.nn.GELU()'s exact erf form.
    c = 0.7978845608028654  # sqrt(2/pi)
    return 0.5 * x * (1.0 + jnp.tanh(c * (x + 0.044715 * x * x * x)))


def _layernorm(x, g, b, eps):
    mean = jnp.mean(x, axis=-1, keepdims=True)
    xc = x - mean
    var = jnp.mean(xc * xc, axis=-1, keepdims=True)
    return xc * lax.rsqrt(var + eps) * g + b


# ----------------------------------------------------------------------------
# Pallas kernels
# ----------------------------------------------------------------------------

def _linear_kernel(*refs, has_bias, has_residual, activation):
    i = 0
    x_ref = refs[i]; i += 1
    w_ref = refs[i]; i += 1
    b_ref = refs[i] if has_bias else None
    i += int(has_bias)
    r_ref = refs[i] if has_residual else None
    i += int(has_residual)
    o_ref = refs[i]

    y = jnp.dot(x_ref[...].astype(MATMUL_DTYPE), w_ref[...],
                preferred_element_type=jnp.float32)
    if has_bias:
        y = y + b_ref[...]
    if activation == "gelu":
        y = _gelu(y)
    if has_residual:
        y = y + r_ref[...].astype(jnp.float32)
    o_ref[...] = y.astype(o_ref.dtype)


def _ln_linear_kernel(*refs, has_bias, activation, eps):
    x_ref, g_ref, bln_ref, w_ref = refs[:4]
    i = 4
    b_ref = refs[i] if has_bias else None
    i += int(has_bias)
    o_ref = refs[i]

    h = _layernorm(x_ref[...].astype(jnp.float32), g_ref[...], bln_ref[...], eps)
    y = jnp.dot(h.astype(MATMUL_DTYPE), w_ref[...],
                preferred_element_type=jnp.float32)
    if has_bias:
        y = y + b_ref[...]
    if activation == "gelu":
        y = _gelu(y)
    o_ref[...] = y.astype(o_ref.dtype)


def _ln_mlp_residual_kernel(x_ref, g_ref, bln_ref, wfc_ref, bfc_ref,
                            wproj_ref, bproj_ref, o_ref, *, eps, hidden_chunk):
    # x + proj(gelu(fc(LN(x)))); hidden dim processed in chunks so the
    # (rows, H) intermediate stays bounded in VMEM/vregs at CLIP-L scale.
    x = x_ref[...].astype(jnp.float32)
    h = _layernorm(x, g_ref[...], bln_ref[...], eps).astype(MATMUL_DTYPE)
    rows = x.shape[0]
    H = wfc_ref.shape[1]
    E_out = wproj_ref.shape[1]
    y = jnp.zeros((rows, E_out), jnp.float32)
    n_chunks = -(-H // hidden_chunk)
    for c in range(n_chunks):
        c0 = c * hidden_chunk
        c1 = min(H, c0 + hidden_chunk)
        a = jnp.dot(h, wfc_ref[:, c0:c1], preferred_element_type=jnp.float32)
        a = _gelu(a + bfc_ref[:, c0:c1])
        y = y + jnp.dot(a.astype(MATMUL_DTYPE), wproj_ref[c0:c1, :],
                        preferred_element_type=jnp.float32)
    o_ref[...] = (x + y + bproj_ref[...]).astype(o_ref.dtype)


def _layernorm_kernel(x_ref, g_ref, b_ref, o_ref, *, eps):
    o_ref[...] = _layernorm(x_ref[...].astype(jnp.float32),
                            g_ref[...], b_ref[...], eps).astype(o_ref.dtype)


def _attention_kernel(qkv_ref, o_ref, *, n_heads, dh, emb, scale, causal):
    # One batch element per grid step.  Block: (1, L, 3E) fused QKV, output
    # (1, L, E) -- all heads handled in-kernel so the HBM store is lane-dense.
    qkv = qkv_ref[0]                               # (L, 3E)
    L = qkv.shape[0]
    if causal:
        row = lax.broadcasted_iota(jnp.int32, (L, L), 0)
        col = lax.broadcasted_iota(jnp.int32, (L, L), 1)
        banned = col > row
    outs = []
    for h in range(n_heads):
        # Fold the softmax scale into q (O(L*dh) instead of O(L*L)).
        q = (qkv[:, h * dh:(h + 1) * dh].astype(jnp.float32) * scale
             ).astype(MATMUL_DTYPE)
        k = qkv[:, emb + h * dh: emb + (h + 1) * dh].astype(MATMUL_DTYPE)
        v = qkv[:, 2 * emb + h * dh: 2 * emb + (h + 1) * dh].astype(MATMUL_DTYPE)
        s = lax.dot_general(q, k, (((1,), (1,)), ((), ())),
                            preferred_element_type=jnp.float32)
        if causal:
            # Diagonal always unmasked -> no fully-masked rows -> no NaN.
            s = jnp.where(banned, -jnp.inf, s)
        m = jnp.max(s, axis=-1, keepdims=True)
        p = jnp.exp(s - m)
        denom = jnp.sum(p, axis=-1, keepdims=True)
        p = p * pl.reciprocal(denom, approx=True)
        o = lax.dot_general(p.astype(MATMUL_DTYPE), v, (((1,), (0,)), ((), ())),
                            preferred_element_type=jnp.float32)
        outs.append(o)
    o_ref[0] = jnp.concatenate(outs, axis=-1).astype(o_ref.dtype)


def _l2norm_kernel(x_ref, o_ref):
    x = x_ref[...].astype(jnp.float32)
    o_ref[...] = x * lax.rsqrt(jnp.sum(x * x, axis=-1, keepdims=True) + 1e-12)


def _scaled_nt_matmul_kernel(a_ref, b_ref, scale_ref, o_ref):
    scale = jnp.exp(scale_ref[0, 0])
    o_ref[...] = scale * lax.dot_general(
        a_ref[...], b_ref[...], (((1,), (1,)), ((), ())),
        preferred_element_type=jnp.float32)


# ----------------------------------------------------------------------------
# Pallas wrappers (row-tiled "parallel" grids)
# ----------------------------------------------------------------------------

def pallas_linear(x, w, b=None, activation=None, residual=None,
                  out_dtype=jnp.float32):
    M, K = x.shape
    N = w.shape[1]
    tm = _row_tile(M, ROW_TILE)
    has_bias = b is not None
    has_res = residual is not None

    in_specs = [pl.BlockSpec((tm, K), lambda i: (i, 0)),
                _const_spec((K, N))]
    args = [x, w]
    if has_bias:
        in_specs.append(_const_spec((1, N)))
        args.append(b.reshape(1, N))
    if has_res:
        in_specs.append(pl.BlockSpec((tm, N), lambda i: (i, 0)))
        args.append(residual)

    kern = functools.partial(_linear_kernel, has_bias=has_bias,
                             has_residual=has_res, activation=activation)
    cost = pl.CostEstimate(
        flops=2 * M * K * N,
        transcendentals=(M * N if activation == "gelu" else 0),
        bytes_accessed=4 * M * K + 2 * K * N + 4 * M * N)
    return pl.pallas_call(
        kern, grid=(pl.cdiv(M, tm),),
        in_specs=in_specs,
        out_specs=pl.BlockSpec((tm, N), lambda i: (i, 0)),
        out_shape=jax.ShapeDtypeStruct((M, N), out_dtype),
        compiler_params=_compiler_params(),
        cost_estimate=cost,
    )(*args)


def pallas_ln_linear(x, g, b_ln, w, b=None, activation=None,
                     out_dtype=jnp.float32, eps=LN_EPS):
    M, K = x.shape
    N = w.shape[1]
    tm = _row_tile(M, ROW_TILE)
    has_bias = b is not None

    in_specs = [pl.BlockSpec((tm, K), lambda i: (i, 0)),
                _const_spec((1, K)),
                _const_spec((1, K)),
                _const_spec((K, N))]
    args = [x, g.reshape(1, K), b_ln.reshape(1, K), w]
    if has_bias:
        in_specs.append(_const_spec((1, N)))
        args.append(b.reshape(1, N))

    kern = functools.partial(_ln_linear_kernel, has_bias=has_bias,
                             activation=activation, eps=eps)
    cost = pl.CostEstimate(
        flops=2 * M * K * N,
        transcendentals=(M * N if activation == "gelu" else 0),
        bytes_accessed=4 * M * K + 2 * K * N + 4 * M * N)
    return pl.pallas_call(
        kern, grid=(pl.cdiv(M, tm),),
        in_specs=in_specs,
        out_specs=pl.BlockSpec((tm, N), lambda i: (i, 0)),
        out_shape=jax.ShapeDtypeStruct((M, N), out_dtype),
        compiler_params=_compiler_params(),
        cost_estimate=cost,
    )(*args)


def pallas_ln_mlp_residual(x, g, b_ln, w_fc, b_fc, w_proj, b_proj, eps=LN_EPS):
    M, E = x.shape
    H = w_fc.shape[1]
    tm = _row_tile(M, MLP_ROW_TILE)
    kern = functools.partial(_ln_mlp_residual_kernel, eps=eps,
                             hidden_chunk=min(H, MLP_HIDDEN_CHUNK))
    cost = pl.CostEstimate(
        flops=4 * M * E * H,
        transcendentals=M * H,
        bytes_accessed=8 * M * E + 4 * E * H)
    return pl.pallas_call(
        kern, grid=(pl.cdiv(M, tm),),
        in_specs=[pl.BlockSpec((tm, E), lambda i: (i, 0)),
                  _const_spec((1, E)),
                  _const_spec((1, E)),
                  _const_spec((E, H)),
                  _const_spec((1, H)),
                  _const_spec((H, E)),
                  _const_spec((1, E))],
        out_specs=pl.BlockSpec((tm, E), lambda i: (i, 0)),
        out_shape=jax.ShapeDtypeStruct((M, E), RESIDUAL_DTYPE),
        compiler_params=_compiler_params(),
        cost_estimate=cost,
    )(x, g.reshape(1, E), b_ln.reshape(1, E), w_fc, b_fc.reshape(1, H),
      w_proj, b_proj.reshape(1, E))


def pallas_layernorm(x, g, b, eps=LN_EPS):
    shape = x.shape
    E = shape[-1]
    x2 = x.reshape(-1, E)
    M = x2.shape[0]
    tm = _row_tile(M, ROW_TILE)
    kern = functools.partial(_layernorm_kernel, eps=eps)
    out = pl.pallas_call(
        kern, grid=(pl.cdiv(M, tm),),
        in_specs=[pl.BlockSpec((tm, E), lambda i: (i, 0)),
                  _const_spec((1, E)),
                  _const_spec((1, E))],
        out_specs=pl.BlockSpec((tm, E), lambda i: (i, 0)),
        out_shape=jax.ShapeDtypeStruct((M, E), jnp.float32),
        compiler_params=_compiler_params(),
    )(x2, g.reshape(1, E), b.reshape(1, E))
    return out.reshape(shape)


def pallas_attention(qkv, n_heads, scale, causal, out_dtype=MATMUL_DTYPE):
    """qkv: (N, L, 3E) fused projection; returns (N, L, E) attention output.

    All heads of one batch element are processed per grid step, so the output
    block is the full (lane-dense) E width and no head split/merge transposes
    are needed outside the kernel.
    """
    # TODO(synk): for production CLIP seq lengths (197 / 77) pad L to a lane
    # multiple (256 / 128) at the embedding stage and mask padded keys; at the
    # small demo shapes full-dim blocks are already legal so padding is skipped.
    N, L, threeE = qkv.shape
    E = threeE // 3
    dh = E // n_heads
    kern = functools.partial(_attention_kernel, n_heads=n_heads, dh=dh,
                             emb=E, scale=scale, causal=causal)
    cost = pl.CostEstimate(
        flops=4 * N * n_heads * L * L * dh,
        transcendentals=N * n_heads * L * L,
        bytes_accessed=2 * N * L * threeE + 2 * N * L * E)
    return pl.pallas_call(
        kern, grid=(N,),
        in_specs=[pl.BlockSpec((1, L, threeE), lambda b: (b, 0, 0))],
        out_specs=pl.BlockSpec((1, L, E), lambda b: (b, 0, 0)),
        out_shape=jax.ShapeDtypeStruct((N, L, E), out_dtype),
        compiler_params=_compiler_params(),
        cost_estimate=cost,
    )(qkv)


def pallas_l2_normalize(x):
    M, D = x.shape
    tm = _row_tile(M, ROW_TILE)
    return pl.pallas_call(
        _l2norm_kernel, grid=(pl.cdiv(M, tm),),
        in_specs=[pl.BlockSpec((tm, D), lambda i: (i, 0))],
        out_specs=pl.BlockSpec((tm, D), lambda i: (i, 0)),
        out_shape=jax.ShapeDtypeStruct((M, D), jnp.float32),
        compiler_params=_compiler_params(),
    )(x)


def pallas_scaled_similarity(img_n, txt_n, logit_scale, tile=256):
    """exp(logit_scale) * img_n @ txt_n.T, tiled over both output axes."""
    N, D = img_n.shape
    M = txt_n.shape[0]
    tn = _row_tile(N, tile)
    tm = _row_tile(M, tile)
    return pl.pallas_call(
        _scaled_nt_matmul_kernel,
        grid=(pl.cdiv(N, tn), pl.cdiv(M, tm)),
        in_specs=[pl.BlockSpec((tn, D), lambda i, j: (i, 0)),
                  pl.BlockSpec((tm, D), lambda i, j: (j, 0)),
                  _const_spec((1, 1), grid_rank=2)],
        out_specs=pl.BlockSpec((tn, tm), lambda i, j: (i, j)),
        out_shape=jax.ShapeDtypeStruct((N, M), jnp.float32),
        compiler_params=_compiler_params(2),
        cost_estimate=pl.CostEstimate(flops=2 * N * M * D, transcendentals=0,
                                      bytes_accessed=4 * (N * D + M * D + N * M)),
    )(img_n, txt_n, logit_scale.reshape(1, 1))


# ----------------------------------------------------------------------------
# Model (glue around the kernels); activations are batch-major (N, L, E)
# ----------------------------------------------------------------------------

def transform_layer(x, p, n_heads, causal):
    """One TransformLayer: x += attn(ln1(x)); x += mlp(ln2(x)).  x: (N, L, E)."""
    N, L, E = x.shape
    dh = E // n_heads
    x2 = x.reshape(N * L, E)

    # Fused LN1 + QKV projection (single (E, 3E) matmul, bf16 output).
    qkv = pallas_ln_linear(x2, p["ln1_g"], p["ln1_b"], p["wqkv"], p["bqkv"],
                           out_dtype=MATMUL_DTYPE)

    # Fused multi-head attention; leading-dim reshapes only (no relayout).
    attn = pallas_attention(qkv.reshape(N, L, 3 * E), n_heads,
                            1.0 / math.sqrt(dh), causal)

    # Fused output projection + bias + residual add.
    x2 = pallas_linear(attn.reshape(N * L, E), p["wo"], p["bo"], residual=x2,
                       out_dtype=RESIDUAL_DTYPE)

    # Fused LN2 + fc + GELU + proj + residual (intermediate stays in VMEM).
    x2 = pallas_ln_mlp_residual(x2, p["ln2_g"], p["ln2_b"],
                                p["fc_w"], p["fc_b"], p["proj_w"], p["proj_b"])
    return x2.reshape(N, L, E)


def encode_image(vp, img):
    # img: NCHW (N, 3, H, W); stride==kernel conv implemented as patch matmul.
    N, C, H, W = img.shape
    ps, E = vp["patch_size"], vp["width"]
    gh, gw = H // ps, W // ps
    patches = (img.reshape(N, C, gh, ps, gw, ps)
                  .transpose(0, 2, 4, 1, 3, 5)
                  .reshape(N * gh * gw, C * ps * ps))
    x = pallas_linear(patches, vp["patch_w"]).reshape(N, gh * gw, E)  # no bias

    cls = jnp.broadcast_to(vp["class_embedding"], (N, 1, E))
    x = jnp.concatenate([cls, x], axis=1)                  # (N, L, E), L = gh*gw+1
    x = x + vp["positional_embedding"]
    x = pallas_layernorm(x, vp["ln_pre_g"], vp["ln_pre_b"])

    for blk in vp["blocks"]:
        x = transform_layer(x, blk, vp["n_heads"], causal=False)

    # ln_post on the CLS token fused with the image projection (no bias).
    return pallas_ln_linear(x[:, 0, :], vp["ln_post_g"], vp["ln_post_b"],
                            vp["img_projection"])


def encode_text(tp, text):
    N, L = text.shape
    x = tp["token_embedding"][text]                        # embedding gather (glue)
    x = x + tp["positional_embedding"]

    for blk in tp["blocks"]:
        x = transform_layer(x, blk, tp["n_heads"], causal=True)

    # LayerNorm is per-token, so it commutes with pooling: pool first, then
    # apply the fused ln_final + text projection on just the pooled rows.
    # TODO(synk): source does `x[arange(N), x.argmax(dim=-1)]` which is ill-formed
    # when batch != seq; use standard CLIP EOT pooling (argmax over token ids).
    eot = jnp.argmax(text, axis=-1)
    pooled = x[jnp.arange(N), eot]                         # (N, E)
    return pallas_ln_linear(pooled, tp["ln_final_g"], tp["ln_final_b"],
                            tp["text_projection"])


def clip_forward(params, img, text):
    image_features = encode_image(params["vision"], img)
    text_features = encode_text(params["text"], text)
    img_n = pallas_l2_normalize(image_features)
    txt_n = pallas_l2_normalize(text_features)
    logits_per_image = pallas_scaled_similarity(img_n, txt_n, params["logit_scale"])
    logits_per_text = logits_per_image.T
    return logits_per_image, logits_per_text


# ----------------------------------------------------------------------------
# Deterministic parameter init
# ----------------------------------------------------------------------------

class KeyGen:
    def __init__(self, key):
        self.key = key

    def __call__(self):
        self.key, sub = jax.random.split(self.key)
        return sub


def init_transform_layer(kg, E, attn_std, proj_std, fc_std):
    z = lambda *s: jnp.zeros(s, jnp.float32)
    o = lambda *s: jnp.ones(s, jnp.float32)
    w = lambda std, *s: (std * jax.random.normal(kg(), s, jnp.float32)).astype(MATMUL_DTYPE)
    return dict(
        ln1_g=o(E), ln1_b=z(E),
        wqkv=w(attn_std, E, 3 * E), bqkv=z(3 * E),       # fused q|k|v projection
        wo=w(proj_std, E, E), bo=z(E),
        ln2_g=o(E), ln2_b=z(E),
        fc_w=w(fc_std, E, 3 * E), fc_b=z(3 * E),         # MLP hidden = 3 * d_model (per spec)
        proj_w=w(proj_std, 3 * E, E), proj_b=z(E),
    )


def init_vision(kg, img_res, patch_size, width, layers, output_dim):
    n_heads = max(width // 64, 1)
    scale = width ** -0.5
    proj_std = (width ** -0.5) * ((2 * layers) ** -0.5)
    attn_std = width ** -0.5
    fc_std = (2 * width) ** -0.5
    n_patches = (img_res // patch_size) ** 2
    f = lambda std, *s: (std * jax.random.normal(kg(), s, jnp.float32))
    w = lambda std, *s: f(std, *s).astype(MATMUL_DTYPE)
    return dict(
        patch_size=patch_size, width=width, n_heads=n_heads,
        patch_w=w(attn_std, 3 * patch_size * patch_size, width),
        class_embedding=f(scale, width),
        positional_embedding=f(scale, n_patches + 1, width),
        ln_pre_g=jnp.ones((width,), jnp.float32), ln_pre_b=jnp.zeros((width,), jnp.float32),
        blocks=[init_transform_layer(kg, width, attn_std, proj_std, fc_std)
                for _ in range(layers)],
        ln_post_g=jnp.ones((width,), jnp.float32), ln_post_b=jnp.zeros((width,), jnp.float32),
        img_projection=w(scale, width, output_dim),
    )


def init_text(kg, vocab_size, context_length, width, n_heads, layers, output_dim):
    proj_std = (width ** -0.5) * ((2 * layers) ** -0.5)
    attn_std = width ** -0.5
    fc_std = (2 * width) ** -0.5
    f = lambda std, *s: (std * jax.random.normal(kg(), s, jnp.float32))
    w = lambda std, *s: f(std, *s).astype(MATMUL_DTYPE)
    return dict(
        width=width, n_heads=n_heads,
        token_embedding=f(0.02, vocab_size, width),
        positional_embedding=f(0.01, context_length, width),
        blocks=[init_transform_layer(kg, width, attn_std, proj_std, fc_std)
                for _ in range(layers)],
        ln_final_g=jnp.ones((width,), jnp.float32), ln_final_b=jnp.zeros((width,), jnp.float32),
        text_projection=w(width ** -0.5, width, output_dim),
    )


# ----------------------------------------------------------------------------
# Main
# ----------------------------------------------------------------------------

if __name__ == "__main__":
    kg = KeyGen(jax.random.PRNGKey(0))

    # Small shapes consistent with CLIP's constructor.
    output_dim = 32
    img_res, patch_size, image_width, vision_layers = 16, 8, 64, 1
    vocab_size, context_length = 50, 8
    text_width, text_n_heads, text_layers = 32, 2, 1
    batch = 2

    params = dict(
        vision=init_vision(kg, img_res, patch_size, image_width, vision_layers, output_dim),
        text=init_text(kg, vocab_size, context_length, text_width, text_n_heads,
                       text_layers, output_dim),
        # TODO(synk): logit_scale is referenced but never defined in the given
        # CLIP.__init__; use the standard CLIP init log(1/0.07).
        logit_scale=jnp.array(math.log(1.0 / 0.07), jnp.float32),
    )

    img = jax.random.normal(kg(), (batch, 3, img_res, img_res), jnp.float32)
    text = jax.random.randint(kg(), (batch, context_length), 0, vocab_size)

    logits_per_image, logits_per_text = clip_forward(params, img, text)
    jax.block_until_ready((logits_per_image, logits_per_text))
    assert logits_per_image.shape == (batch, batch)
    assert logits_per_text.shape == (batch, batch)
    print("KERNEL_OK")
</pallas_src>

<mosaic_0001>
module attributes {stable_mosaic.version = 11 : i64} {
  func.func @_probe_kernel(%arg0: i32, %arg1: memref<8x128xf32, #tpu.memory_space<vmem>>, %arg2: memref<8x128xf32, #tpu.memory_space<vmem>>) attributes {dimension_semantics = [#tpu.dimension_semantics<arbitrary>], iteration_bounds = array<i64: 2>, scalar_prefetch = 0 : i64, scratch_operands = 0 : i64, tpu.core_type = #tpu.core_type<tc>, window_params = [{pipeline_mode = #tpu.pipeline_mode<synchronous>, transform_indices = @transform_0, window_bounds = array<i64: 8, 128>}, {pipeline_mode = #tpu.pipeline_mode<synchronous>, transform_indices = @transform_1, window_bounds = array<i64: 8, 128>}]} {
    %c0 = arith.constant 0 : index
    %c0_0 = arith.constant 0 : index
    %0 = vector.load %arg1[%c0, %c0_0] : memref<8x128xf32, #tpu.memory_space<vmem>>, vector<8x128xf32>
    %cst = arith.constant 1.000000e+00 : f32
    %1 = vector.broadcast %cst : f32 to vector<8x128xf32>
    %2 = arith.addf %0, %1 : vector<8x128xf32>
    %c0_1 = arith.constant 0 : index
    %c0_2 = arith.constant 0 : index
    %3 = vector.load %arg2[%c0_1, %c0_2] : memref<8x128xf32, #tpu.memory_space<vmem>>, vector<8x128xf32>
    tpu.vector_store %arg2[%c0_1, %c0_2], %2 {strides = array<i32>} : memref<8x128xf32, #tpu.memory_space<vmem>>, vector<8x128xf32>,
    return
  }
  func.func @transform_0(%arg0: i32) -> (i32, i32) {
    %c0_i32 = arith.constant 0 : i32
    %c0_i32_0 = arith.constant 0 : i32
    %c0_i32_1 = arith.constant 0 : i32
    return %c0_i32, %c0_i32_0 : i32, i32
  }
  func.func @transform_1(%arg0: i32) -> (i32, i32) {
    %c0_i32 = arith.constant 0 : i32
    %c0_i32_0 = arith.constant 0 : i32
    %c0_i32_1 = arith.constant 0 : i32
    return %c0_i32, %c0_i32_0 : i32, i32
  }
}

module attributes {stable_mosaic.version = 11 : i64} {
  func.func @_linear_kernel(%arg0: i32, %arg1: memref<8x192xf32, #tpu.memory_space<vmem>>, %arg2: memref<192x64xbf16, #tpu.memory_space<vmem>>, %arg3: memref<8x64xf32, #tpu.memory_space<vmem>>) attributes {dimension_semantics = [#tpu.dimension_semantics<parallel>], iteration_bounds = array<i64: 1>, scalar_prefetch = 0 : i64, scratch_operands = 0 : i64, tpu.core_type = #tpu.core_type<tc>, window_params = [{transform_indices = @transform_0, window_bounds = array<i64: 8, 192>}, {pipeline_mode = #tpu.pipeline_mode<synchronous>, transform_indices = @transform_1, window_bounds = array<i64: 192, 64>}, {transform_indices = @transform_2, window_bounds = array<i64: 8, 64>}]} {
    %c0 = arith.constant 0 : index
    %c0_0 = arith.constant 0 : index
    %0 = vector.load %arg1[%c0, %c0_0] : memref<8x192xf32, #tpu.memory_space<vmem>>, vector<8x192xf32>
    %1 = arith.truncf %0 : vector<8x192xf32> to vector<8x192xbf16>
    %c0_1 = arith.constant 0 : index
    %c0_2 = arith.constant 0 : index
    %2 = vector.load %arg2[%c0_1, %c0_2] : memref<192x64xbf16, #tpu.memory_space<vmem>>, vector<192x64xbf16>
    %cst = arith.constant dense<0.000000e+00> : vector<8x64xf32>
    %3 = tpu.matmul %1, %2, %cst {dimension_numbers = #tpu.dot_dimension_numbers<[1], [0], [0], [1], [0, 0, 1, 1], [], []>} : vector<8x192xbf16>, vector<192x64xbf16>, vector<8x64xf32> -> vector<8x64xf32>
    %c0_3 = arith.constant 0 : index
    %c0_4 = arith.constant 0 : index
    %4 = vector.load %arg3[%c0_3, %c0_4] : memref<8x64xf32, #tpu.memory_space<vmem>>, vector<8x64xf32>
    tpu.vector_store %arg3[%c0_3, %c0_4], %3 {strides = array<i32>} : memref<8x64xf32, #tpu.memory_space<vmem>>, vector<8x64xf32>,
    return
  }
  func.func @transform_0(%arg0: i32) -> (i32, i32) {
    %c0_i32 = arith.constant 0 : i32
    %c0_i32_0 = arith.constant 0 : i32
    return %arg0, %c0_i32 : i32, i32
  }
  func.func @transform_1(%arg0: i32) -> (i32, i32) {
    %c0_i32 = arith.constant 0 : i32
    %c0_i32_0 = arith.constant 0 : i32
    %c0_i32_1 = arith.constant 0 : i32
    return %c0_i32, %c0_i32_0 : i32, i32
  }
  func.func @transform_2(%arg0: i32) -> (i32, i32) {
    %c0_i32 = arith.constant 0 : i32
    %c0_i32_0 = arith.constant 0 : i32
    return %arg0, %c0_i32 : i32, i32
  }
}

</mosaic_0001>

<bundles_post_ra>
// kernel: tpu_custom_call.1
= control target key start
LH: loop header
LB: loop body
LE: loop exit
PB: predicated region body
PF: predicated region fallthrough
CT: control target
= control target key end

     0   :  { %6 = vsyncpa [#allocation3], 0  ;;  %s341_s0 = inlined_call_operand.hbm [shape: f32[8,128], index: 0, kind: input, shape index: {}]   ;;  %s342_s1 = inlined_call_operand.hbm [shape: f32[8,128], index: 1, kind: output, shape index: {}]  }
   0x1   :  { %7 = vsyncpa [#allocation4], 0  ;;  %s262_s6 = smov 0  }
   0x2 LB: > { %s145_s7 = sadd.s32 4294967295, %s248_s6   ;;  %p146_p0 = scmp.ge.s32.totalorder %s248_s6, 1  ;;  %s248_s6 = sphi %s262_s6, %s13_s6  }
   0x3   : > { %p60_p1 = scmp.lt.s32.totalorder %s248_s6, 3  ;;  %p276_p3 = scmp.eq.s32.totalorder %s145_s7, 0 }
   0x4   : > { %s250_s10 = smov [#allocation2]   ;;  %s180_s15 = scalar_lea.hbm %s341_s0, 128 }
   0x5   : > { %p270_p2 = pnand %p146_p0, %p60_p1  ;;  %s73_s11 = sshll.u32 %s250_s10, 4  ;;  %s74_s11 = int_to_ptr.vmem [resolvable:$true] %s73_s11 }
   0x6   : > { %s347_s9 = scalar_select %p276_p3, 1, 0 }
   0x7   : > { %s346_s8 = scalar_select %p270_p2, 1, 0 }
   0x8   : > { %p162_p4 = pneg %p270_p2  ;;  %p181_p6 = scmp.ne.s32.totalorder %s341_s0, %s180_s15 }
   0x9   : > { %p187_p10 = scmp.lt.u32.totalorder %s180_s15, %s341_s0 }
   0xa   : > { %p284_p5 = pnand %p276_p3, %p162_p4 }
   0xc   : > { %p182_p7 = pneg %p284_p5 }
   0xe   : > { %p183_p8 = pnand %p182_p7, %p181_p6 }
  0x10   : > { %p184_p9 = pneg %p183_p8 }
  0x12   : > { %p189_p11 = pnand %p187_p10, %p184_p9 }
  0x14   : > { %192 = shalt.err (!%p189_p11)
}
  0x15   : > { %s193_s20 = scalar_lea.vmem %s74_s11, 128  ;;  %p201_p1 = scmp.lt.s32.totalorder %s74_s11, %s74_s11 }
  0x16   : > { %p194_p12 = scmp.ne.s32.totalorder %s74_s11, %s193_s20  ;;  %p202_p4 = scmp.lt.s32.totalorder %s193_s20, %s193_s20 }
  0x18   : > { %p196_p13 = pnand %p194_p12, %p182_p7  ;;  %p203_p3 = por %p202_p4, %p201_p1 }
  0x1a   : > { %p197_p0 = pneg %p196_p13 }
  0x1c   : > { %p204_p2 = pnand %p203_p3, %p197_p0 }
  0x1e   : > { %207 = shalt.err (!%p204_p2)
}
  0x1f   : > { %165 = dma.hbm_to_vmem [thread:$0]  (!%p284_p5), %s341_s0, 128, %s74_s11, [#allocation3]  }
  0x20   : > { %p349_p6 = scmp.ne.s32.totalorder %s346_s8, 0 }
  0x21   : > { %p350_p8 = scmp.ne.s32.totalorder (!%p349_p6), %s347_s9, 0 }
  0x22   : > { %86 = sbr.rel (%p349_p6) target bundleno = 67 (0x43), region = 24 }
  0x29   : > { %239 = dma.done.wait (%p350_p8), [#allocation3], 128  }
  0x2a   : > { %241 = vsyncadd (%p350_p8), [#allocation3], 4294967168  ;;  %s251_s23 = smov [#allocation5]   ;;  %v96_v0 = vld [vmem:[#allocation2] sm:$0xff]  ;;  %p312_p2 = scmp.eq.s32.totalorder %s145_s7, 1 }
  0x2b   : > { %s106_s24 = sshll.u32 %s251_s23, 4  ;;  %v97_v1 = vadd.f32 1.0, %v96_v0  ;;  %s107_s24 = int_to_ptr.vmem [resolvable:$true] %s106_s24 }
  0x2c   : > { %s208_s26 = scalar_lea.vmem %s107_s24, 128  ;;  %p215_p9 = scmp.lt.s32.totalorder %s107_s24, %s107_s24 }
  0x2d   : > { %98 = vst [vmem:[#allocation5] sm:$0xff] %v97_v1  ;;  %p209_p3 = scmp.ne.s32.totalorder %s107_s24, %s208_s26  ;;  %p216_p10 = scmp.lt.s32.totalorder %s208_s26, %s208_s26 }
  0x2f   : > { %p210_p5 = pnand %p209_p3, %p312_p2  ;;  %p217_p11 = por %p216_p10, %p215_p9 }
  0x31   : > { %p211_p7 = pneg %p210_p5 }
  0x33   : > { %p218_p12 = pnand %p217_p11, %p211_p7 }
  0x35   : > { %221 = shalt.err (!%p218_p12)
}
  0x36   : > { %s222_s29 = scalar_lea.hbm %s342_s1, 128 }
  0x37   : > { %p223_p13 = scmp.ne.s32.totalorder %s342_s1, %s222_s29  ;;  %p228_p4 = scmp.lt.u32.totalorder %s222_s29, %s342_s1 }
  0x39   : > { %p224_p0 = pnand %p223_p13, %p312_p2 }
  0x3b   : > { %p225_p1 = pneg %p224_p0 }
  0x3d   : > { %p230_p6 = pnand %p228_p4, %p225_p1 }
  0x3f   : > { %233 = shalt.err (!%p230_p6)
}
  0x40   : > { %159 = dma.vmem_to_hbm [thread:$0]  (%p312_p2), %s107_s24, 128, %s342_s1, [#allocation4]  }
  0x41   : > { %243 = dma.done.wait (%p312_p2), [#allocation4], 128  }
  0x42   : > { %245 = vsyncadd (%p312_p2), [#allocation4], 4294967168 }
  0x43 PF: > { %s13_s6 = sadd.s32 1, %s248_s6  }
  0x44   : > { %p10_p8 = scmp.ge.s32.totalorder %s13_s6, 4  }
  0x46   :  { %12 = sbr.rel (!%p10_p8) target bundleno = 2 (0x2), region = 53 }
  0x4d   :  { %119 = vsyncpa [#allocation3], 1 }
  0x4e   :  { %121 = vsyncpa [#allocation3 + $0x1], 1 }
  0x4f   :  { %122 = vsyncpa [#allocation4], 1 }
  0x50   :  { %124 = vsyncpa [#allocation4 + $0x1], 1 }

// kernel: tpu_custom_call.1
= control target key start
LH: loop header
LB: loop body
LE: loop exit
PB: predicated region body
PF: predicated region fallthrough
CT: control target
= control target key end

     0   :  { %v223_v1 = vmov 0   ;;  %vm113_vm0 = vcmask 523264   ;;  %s296_s0 = inlined_call_operand.vmem [shape: f32[8,192], index: 0, kind: input, shape index: {}]   ;;  %s297_s1 = inlined_call_operand.vmem [shape: bf16[192,64], index: 1, kind: input, shape index: {}]   ;;  %s298_s2 = inlined_call_operand.hbm [shape: f32[8,64], index: 2, kind: output, shape index: {}]  }
   0x1   :  { %v187_v0 = vld [vmem:[%s297_s1] sm:$0xff]   ;;  %117 = vmatprep.subr.bf16.mxu0 %v223_v1  ;;  %v188_v2 = vld [vmem:[%s297_s1 + $0x8] sm:$0xff]   ;;  %v189_v3 = vld [vmem:[%s297_s1 + $0x10] sm:$0xff]  }
   0x2   :  { %118 = vmatpush1.bf16.msra.mxu0 %v187_v0  ;;  %v190_v4 = vld [vmem:[%s297_s1 + $0x18] sm:$0xff]   ;;  %v14_v5 = vld [vmem:[%s296_s0 + $0x8] sm:$0xff] }
   0x3   :  { %119 = vmatprep.subr.bf16.mxu0 %v223_v1 }
   0x6   :  { %120 = vmatpush1.bf16.msra.mxu0 %v188_v2 }
   0x7   :  { %121 = vmatprep.subr.bf16.mxu0 %v223_v1 }
   0xa   :  { %122 = vmatpush1.bf16.msra.mxu0 %v189_v3 }
   0xb   :  { %123 = vmatprep.subr.bf16.mxu0 %v223_v1 }
   0xc   :  { %7 = vsyncpa [#allocation3], 0  ;;  %v16_v6 = vpack.c.bf16 %v14_v5, %v14_v5  ;;  %v191_v7 = vld [vmem:[%s297_s1 + $0x20] sm:$0xff]   ;;  %v192_v8 = vld [vmem:[%s297_s1 + $0x28] sm:$0xff]   ;;  %s224_s9 = smov [#allocation2]  }
   0xd   :  { %v193_v9 = vld [vmem:[%s297_s1 + $0x30] sm:$0xff]   ;;  %v194_v10 = vld [vmem:[%s297_s1 + $0x38] sm:$0xff]   ;;  %v195_v11 = vld [vmem:[%s297_s1 + $0x40] sm:$0xff]   ;;  %s164_s10 = sshll.u32 %s224_s9, 4  ;;  %s165_s10 = int_to_ptr.vmem [resolvable:$true] %s164_s10 }
   0xe   :  { %124 = vmatpush1.bf16.msra.mxu0 %v190_v4  ;;  %184 = vmatprep.mubr.msk.bf16.mxu0 %vm113_vm0, %v16_v6  ;;  %v196_v12 = vld [vmem:[%s297_s1 + $0x48] sm:$0xff]   ;;  %v197_v13 = vld [vmem:[%s297_s1 + $0x50] sm:$0xff]   ;;  %v198_v14 = vld [vmem:[%s297_s1 + $0x58] sm:$0xff]   ;;  %s199_s11 = scalar_lea.vmem %s165_s10, 128  ;;  %p204_p1 = scmp.lt.s32.totalorder %s165_s10, %s165_s10 }
   0xf   :  { %125 = vmatprep.subr.bf16.mxu0 %v223_v1  ;;  %v13_v15 = vld [vmem:[%s296_s0] sm:$0xff]  ;;  %p200_p0 = scmp.ne.s32.totalorder %s165_s10, %s199_s11  ;;  %p205_p2 = scmp.lt.s32.totalorder %s199_s11, %s199_s11 }
  0x10   :  { %v15_v16 = vpack.c.bf16 %v13_v15, %v13_v15 }
  0x11   :  { %p206_p3 = por %p205_p2, %p204_p1 }
  0x12   :  { %126 = vmatpush1.bf16.msra.mxu0 %v191_v7 }
  0x13   :  { %127 = vmatprep.subr.bf16.mxu0 %v223_v1  ;;  %p207_p4 = pnand %p206_p3, %p200_p0 }
  0x16   :  { %128 = vmatpush1.bf16.msra.mxu0 %v192_v8 }
  0x17   :  { %129 = vmatprep.subr.bf16.mxu0 %v223_v1 }
  0x1a   :  { %130 = vmatpush1.bf16.msra.mxu0 %v193_v9 }
  0x1b   :  { %131 = vmatprep.subr.bf16.mxu0 %v223_v1 }
  0x1e   :  { %132 = vmatpush1.bf16.msra.mxu0 %v194_v10 }
  0x1f   :  { %133 = vmatprep.subr.bf16.mxu0 %v223_v1 }
  0x22   :  { %134 = vmatpush1.bf16.msra.mxu0 %v195_v11 }
  0x23   :  { %135 = vmatprep.subr.bf16.mxu0 %v223_v1 }
  0x26   :  { %136 = vmatpush1.bf16.msra.mxu0 %v196_v12 }
  0x27   :  { %137 = vmatprep.subr.bf16.mxu0 %v223_v1 }
  0x2a   :  { %138 = vmatpush1.bf16.msra.mxu0 %v197_v13 }
  0x2b   :  { %139 = vmatprep.subr.bf16.mxu0 %v223_v1 }
  0x2e   :  { %140 = vmatpush1.bf16.msra.mxu0 %v198_v14 }
  0x31   :  { %150 = vmatmul.mubr.bf16.vlgmr.msra.gmra.mrb[0].mxu0 %v15_v16 }
 0x104   :  { %v151_v17 = vpop.f32.mrb[0].mxu0 }
 0x105   :  { %157 = vst.msk [vmem:[#allocation2] sm:$0xff] %vm113_vm0, %v151_v17  ;;  %v153_v18 = vpop.f32.mrb[1].mxu0 }
 0x106   :  { %v154_v19 = vpop.f32.mrb[2].mxu0 }
 0x107   :  { %210 = shalt.err (!%p207_p4)
}
 0x108   :  { %s211_s12 = scalar_lea.hbm %s298_s2, 128 }
 0x109   :  { %p212_p5 = scmp.ne.s32.totalorder %s298_s2, %s211_s12  ;;  %p215_p6 = scmp.lt.u32.totalorder %s211_s12, %s298_s2 }
 0x10b   :  { %p217_p7 = pnand %p215_p6, %p212_p5 }
 0x10d   :  { %220 = shalt.err (!%p217_p7)
}
 0x10e   :  { %167 = dma.vmem_to_hbm [thread:$0]  %s165_s10, 128, %s298_s2, [#allocation3]   ;;  %v155_v20 = vpop.f32.mrb[3].mxu0 }
 0x10f   :  { %221 = dma.done.wait [#allocation3], 128  }
 0x110   :  { %222 = vsyncadd [#allocation3], 4294967168 }
 0x111   :  { %171 = vsyncpa [#allocation3], 1 }

</bundles_post_ra>
